<compile_context>
chip_gen: v7x
topology: tpu7x:2x2x1
jax: 0.10.0
libtpu: 0.0.40
codegen_flags: <defaults>
</compile_context>

<pallas_src>
import jax
import jax.numpy as jnp
from jax import lax
from jax.experimental import pallas as pl
from jax.experimental.pallas import tpu as pltpu


def _round_up(x, m):
    return (x + m - 1) // m * m


def _bytes_f32(*shape):
    n = 1
    for s in shape:
        n *= int(s)
    return 4 * n


def _vmem_limit(resident_bytes):
    # resident set + double-buffering headroom, clamped to a v7x-safe cap.
    return int(min(max(2 * resident_bytes + (8 << 20), 16 << 20), 64 << 20))


# ---------------------------------------------------------------------------
# Kernel A (node-tiled, "parallel"):
#   h = mask ? dec_token : PReLU(x) @ W_enc
# ---------------------------------------------------------------------------
def encode_kernel(x_ref, mask_ref, alpha_ref, w_enc_ref, dec_tok_ref, h_ref):
    x = x_ref[...]
    a = jnp.where(x >= 0.0, x, alpha_ref[...] * x)        # PReLU (shared alpha row)
    h = jnp.dot(a, w_enc_ref[...], preferred_element_type=jnp.float32)
    h_ref[...] = jnp.where(mask_ref[...] > 0.0, dec_tok_ref[...], h)


# ---------------------------------------------------------------------------
# Kernel B (edge-tiled, "arbitrary" reduction, resident agg accumulator):
#   agg[i] = sum_{e: dst[e]==i} relu(h[src[e]] + edge_emb[e])
# One-hot gather/scatter blocks are built in-kernel from the int32 edge ids
# (broadcasted_iota == id), so no E x N matrix ever touches HBM.
# ---------------------------------------------------------------------------
def scatter_kernel(h_ref, edge_emb_ref, src_ref, dst_ref, agg_ref):
    @pl.when(pl.program_id(0) == 0)
    def _():
        agg_ref[...] = jnp.zeros_like(agg_ref)

    n_pad = agg_ref.shape[0]
    te = src_ref.shape[0]

    # gather x_j = h[src]  via [TE, N] one-hot built on the fly (MXU matmul)
    src = src_ref[...]                                               # [TE, 1] int32
    src_oh = (lax.broadcasted_iota(jnp.int32, (te, n_pad), 1) == src)
    x_j = jnp.dot(src_oh.astype(jnp.float32), h_ref[...],
                  preferred_element_type=jnp.float32)                # [TE, H]
    msg = jnp.maximum(x_j + edge_emb_ref[...], 0.0)

    # scatter-add over destinations via [N, TE] one-hot; padded edges carry
    # dst == -1 and never match, so they contribute nothing.
    dst = dst_ref[...]                                               # [1, TE] int32
    dst_ohT = (lax.broadcasted_iota(jnp.int32, (n_pad, te), 0) == dst)
    agg_ref[...] += jnp.dot(dst_ohT.astype(jnp.float32), msg,
                            preferred_element_type=jnp.float32)      # [N, H]


# ---------------------------------------------------------------------------
# Kernel C (node-tiled, "parallel"):
#   out = relu(((1+eps)*h + agg) @ W1' + b1') @ W23 + b23
# with BatchNorm folded into W1'/b1' and W23 = W2 @ W_out, b23 = b2 @ W_out + b_out.
# ---------------------------------------------------------------------------
def mlp_kernel(h_ref, agg_ref, ope_ref, w1_ref, b1_ref, w23_ref, b23_ref, out_ref):
    pre = ope_ref[...] * h_ref[...] + agg_ref[...]        # (1+eps)*h + agg
    hid = jnp.maximum(
        jnp.dot(pre, w1_ref[...], preferred_element_type=jnp.float32) + b1_ref[...],
        0.0)
    out_ref[...] = (jnp.dot(hid, w23_ref[...], preferred_element_type=jnp.float32)
                    + b23_ref[...])


def init_params(key, hidden_size, out_dim, bond_vocab=(5, 6, 2)):
    keys = jax.random.split(key, 4 + len(bond_vocab))

    def lin(k, fan_in, fan_out):
        return (jax.random.normal(k, (fan_in, fan_out), jnp.float32)
                / jnp.sqrt(jnp.float32(fan_in)))

    return {
        "alpha": jnp.array([[0.25]], jnp.float32),       # PReLU init
        "eps": jnp.array([[0.0]], jnp.float32),          # GIN eps init
        "dec_token": jnp.zeros((1, hidden_size), jnp.float32),
        "w_enc": lin(keys[0], hidden_size, hidden_size),
        "w1": lin(keys[1], hidden_size, 2 * hidden_size),
        "b1": jnp.zeros((1, 2 * hidden_size), jnp.float32),
        # inference-mode BatchNorm1d with default stats (mean=0, var=1, gamma=1, beta=0)
        "bn_scale": jnp.ones((1, 2 * hidden_size), jnp.float32) / jnp.sqrt(1.0 + 1e-5),
        "bn_shift": jnp.zeros((1, 2 * hidden_size), jnp.float32),
        "w2": lin(keys[2], 2 * hidden_size, hidden_size),
        "b2": jnp.zeros((1, hidden_size), jnp.float32),
        "w_out": lin(keys[3], hidden_size, out_dim),
        "b_out": jnp.zeros((1, out_dim), jnp.float32),
        # BondEncoder embedding tables (one per bond feature)
        "bond_emb": [jax.random.normal(keys[4 + i], (v, hidden_size), jnp.float32) * 0.1
                     for i, v in enumerate(bond_vocab)],
    }


def gnn_decoder_forward(params, x, edge_index, edge_attr, masked_node_indices,
                        *, node_tile=256, edge_tile=512):
    f32 = jnp.float32
    N, H = x.shape
    E = edge_index.shape[1]
    out_dim = params["w_out"].shape[1]

    # lane-dense padded sizes (last axis -> multiple of 128)
    H_pad = _round_up(H, 128)
    H2_pad = _round_up(2 * H, 128)
    O_pad = _round_up(out_dim, 128)

    TN = _round_up(min(node_tile, _round_up(N, 8)), 8)
    N_pad = _round_up(N, TN)
    TE = _round_up(min(edge_tile, _round_up(E, 128)), 128)
    E_pad = _round_up(E, TE)

    def pad2(a, r, c):
        a = a.astype(f32)
        return jnp.zeros((r, c), f32).at[:a.shape[0], :a.shape[1]].set(a)

    # ---- glue: parameter folding & operand layout (plain JAX) ----
    # TODO(synk): BondEncoder embedding-table gather stays in JAX glue (no
    # clean in-kernel equivalent without a DMA-gather path).
    edge_emb = jnp.zeros((E, H), f32)
    for i, table in enumerate(params["bond_emb"]):
        edge_emb = edge_emb + table[edge_attr[:, i]]

    x_p = pad2(x, N_pad, H_pad)
    mask = jnp.zeros((N_pad, 1), f32).at[masked_node_indices, 0].set(1.0)
    w_enc_p = pad2(params["w_enc"], H_pad, H_pad)
    dec_tok_p = pad2(params["dec_token"], 1, H_pad)
    edge_emb_p = pad2(edge_emb, E_pad, H_pad)

    # fold inference BatchNorm into Linear1
    w1f = params["w1"] * params["bn_scale"]
    b1f = params["b1"] * params["bn_scale"] + params["bn_shift"]
    # fuse Linear2 with the output head (no nonlinearity in between)
    w23 = params["w2"] @ params["w_out"]
    b23 = params["b2"] @ params["w_out"] + params["b_out"]
    w1f_p = pad2(w1f, H_pad, H2_pad)
    b1f_p = pad2(b1f, 1, H2_pad)
    w23_p = pad2(w23, H2_pad, O_pad)
    b23_p = pad2(b23, 1, O_pad)

    # edge ids: src padded with 0 (harmless, gather only), dst padded with -1
    # (never matches a node id -> zero scatter contribution)
    src_p = (jnp.zeros((E_pad, 1), jnp.int32)
             .at[:E, 0].set(edge_index[0].astype(jnp.int32)))
    dst_p = (jnp.full((1, E_pad), -1, jnp.int32)
             .at[0, :E].set(edge_index[1].astype(jnp.int32)))

    # broadcast the two scalars to lane-dense rows once (hoisted, never
    # re-broadcast per grid iteration)
    alpha_row = jnp.broadcast_to(params["alpha"].astype(f32), (1, H_pad))
    ope_row = jnp.broadcast_to((1.0 + params["eps"]).astype(f32), (1, H_pad))

    n_node_tiles = N_pad // TN
    n_edge_tiles = E_pad // TE

    # ---- Kernel A: encoder ----
    vmem_a = _vmem_limit(_bytes_f32(H_pad, H_pad) + 2 * _bytes_f32(1, H_pad)
                         + 2 * (2 * _bytes_f32(TN, H_pad) + _bytes_f32(TN, 1)))
    h = pl.pallas_call(
        encode_kernel,
        out_shape=jax.ShapeDtypeStruct((N_pad, H_pad), f32),
        grid=(n_node_tiles,),
        in_specs=[
            pl.BlockSpec((TN, H_pad), lambda i: (i, 0)),      # x tile
            pl.BlockSpec((TN, 1), lambda i: (i, 0)),          # mask tile
            pl.BlockSpec((1, H_pad), lambda i: (0, 0)),       # alpha row (resident)
            pl.BlockSpec((H_pad, H_pad), lambda i: (0, 0)),   # W_enc (resident)
            pl.BlockSpec((1, H_pad), lambda i: (0, 0)),       # dec_token (resident)
        ],
        out_specs=pl.BlockSpec((TN, H_pad), lambda i: (i, 0)),
        compiler_params=pltpu.CompilerParams(
            dimension_semantics=("parallel",), vmem_limit_bytes=vmem_a),
    )(x_p, mask, alpha_row, w_enc_p, dec_tok_p)

    # ---- Kernel B: message passing / scatter-add ----
    vmem_b = _vmem_limit(2 * _bytes_f32(N_pad, H_pad)
                         + 2 * (_bytes_f32(TE, H_pad) + 2 * _bytes_f32(TE, 1)))
    agg = pl.pallas_call(
        scatter_kernel,
        out_shape=jax.ShapeDtypeStruct((N_pad, H_pad), f32),
        grid=(n_edge_tiles,),
        in_specs=[
            pl.BlockSpec((N_pad, H_pad), lambda e: (0, 0)),   # h (resident, loaded once)
            pl.BlockSpec((TE, H_pad), lambda e: (e, 0)),      # edge_emb tile (pipelined)
            pl.BlockSpec((TE, 1), lambda e: (e, 0)),          # src ids tile
            pl.BlockSpec((1, TE), lambda e: (0, e)),          # dst ids tile
        ],
        out_specs=pl.BlockSpec((N_pad, H_pad), lambda e: (0, 0)),  # agg accumulator
        compiler_params=pltpu.CompilerParams(
            dimension_semantics=("arbitrary",), vmem_limit_bytes=vmem_b),
    )(h, edge_emb_p, src_p, dst_p)

    # ---- Kernel C: GIN MLP + output head ----
    vmem_c = _vmem_limit(_bytes_f32(H_pad, H2_pad) + _bytes_f32(H2_pad, O_pad)
                         + _bytes_f32(1, H2_pad) + _bytes_f32(1, O_pad)
                         + _bytes_f32(1, H_pad)
                         + 2 * (2 * _bytes_f32(TN, H_pad) + _bytes_f32(TN, O_pad)))
    out_p = pl.pallas_call(
        mlp_kernel,
        out_shape=jax.ShapeDtypeStruct((N_pad, O_pad), f32),
        grid=(n_node_tiles,),
        in_specs=[
            pl.BlockSpec((TN, H_pad), lambda i: (i, 0)),      # h tile
            pl.BlockSpec((TN, H_pad), lambda i: (i, 0)),      # agg tile
            pl.BlockSpec((1, H_pad), lambda i: (0, 0)),       # (1+eps) row (resident)
            pl.BlockSpec((H_pad, H2_pad), lambda i: (0, 0)),  # W1 (BN folded, resident)
            pl.BlockSpec((1, H2_pad), lambda i: (0, 0)),      # b1'
            pl.BlockSpec((H2_pad, O_pad), lambda i: (0, 0)),  # W2 @ W_out (resident)
            pl.BlockSpec((1, O_pad), lambda i: (0, 0)),       # b23
        ],
        out_specs=pl.BlockSpec((TN, O_pad), lambda i: (i, 0)),
        compiler_params=pltpu.CompilerParams(
            dimension_semantics=("parallel",), vmem_limit_bytes=vmem_c),
    )(h, agg, ope_row, w1f_p, b1f_p, w23_p, b23_p)

    return out_p[:N, :out_dim]


def reference_forward(params, x, edge_index, edge_attr, masked_node_indices):
    """Pure-JAX reference (unfused, f32) for validation."""
    hp = jax.lax.Precision.HIGHEST
    alpha = params["alpha"][0, 0]
    eps = params["eps"][0, 0]
    h = jnp.where(x >= 0.0, x, alpha * x)
    h = jnp.dot(h, params["w_enc"], precision=hp)
    h = h.at[masked_node_indices].set(params["dec_token"][0])
    edge_emb = sum(t[edge_attr[:, i]] for i, t in enumerate(params["bond_emb"]))
    msg = jnp.maximum(h[edge_index[0]] + edge_emb, 0.0)
    agg = jnp.zeros_like(h).at[edge_index[1]].add(msg)
    pre = (1.0 + eps) * h + agg
    hid = jnp.dot(pre, params["w1"], precision=hp) + params["b1"]
    hid = jnp.maximum(hid * params["bn_scale"] + params["bn_shift"], 0.0)
    conv_out = jnp.dot(hid, params["w2"], precision=hp) + params["b2"]
    return jnp.dot(conv_out, params["w_out"], precision=hp) + params["b_out"]


if __name__ == "__main__":
    key = jax.random.PRNGKey(0)
    k_param, k_x, k_src, k_dst, k_attr = jax.random.split(key, 5)

    # small but multi-tile: 2 node tiles of 32, 2 edge tiles of 128
    N, H, E, OUT_DIM = 48, 32, 200, 16
    bond_vocab = (5, 6, 2)

    params = init_params(k_param, H, OUT_DIM, bond_vocab)

    x = jax.random.normal(k_x, (N, H), jnp.float32)
    edge_index = jnp.stack([jax.random.randint(k_src, (E,), 0, N),
                            jax.random.randint(k_dst, (E,), 0, N)], axis=0)
    edge_attr = jnp.stack(
        [jax.random.randint(jax.random.fold_in(k_attr, i), (E,), 0, v)
         for i, v in enumerate(bond_vocab)], axis=1)
    masked_node_indices = jnp.array([1, 4, 6, 17, 33], jnp.int32)

    out = gnn_decoder_forward(params, x, edge_index, edge_attr, masked_node_indices,
                              node_tile=32, edge_tile=128)
    out = jax.block_until_ready(out)

    ref = reference_forward(params, x, edge_index, edge_attr, masked_node_indices)
    if not jnp.allclose(out, ref, atol=1e-2, rtol=1e-2):
        raise AssertionError(
            f"mismatch: max abs err = {float(jnp.max(jnp.abs(out - ref)))}")

    print("KERNEL_OK")
</pallas_src>

<mosaic_0001>
module attributes {stable_mosaic.version = 11 : i64} {
  func.func @encode_kernel(%arg0: i32, %arg1: memref<32x128xf32, #tpu.memory_space<vmem>>, %arg2: memref<32x1xf32, #tpu.memory_space<vmem>>, %arg3: memref<1x128xf32, #tpu.memory_space<vmem>>, %arg4: memref<128x128xf32, #tpu.memory_space<vmem>>, %arg5: memref<1x128xf32, #tpu.memory_space<vmem>>, %arg6: memref<32x128xf32, #tpu.memory_space<vmem>>) attributes {dimension_semantics = [#tpu.dimension_semantics<parallel>], iteration_bounds = array<i64: 2>, scalar_prefetch = 0 : i64, scratch_operands = 0 : i64, tpu.core_type = #tpu.core_type<tc>, window_params = [{transform_indices = @transform_0, window_bounds = array<i64: 32, 128>}, {transform_indices = @transform_1, window_bounds = array<i64: 32, 1>}, {pipeline_mode = #tpu.pipeline_mode<synchronous>, transform_indices = @transform_2, window_bounds = array<i64: 1, 128>}, {pipeline_mode = #tpu.pipeline_mode<synchronous>, transform_indices = @transform_3, window_bounds = array<i64: 128, 128>}, {pipeline_mode = #tpu.pipeline_mode<synchronous>, transform_indices = @transform_4, window_bounds = array<i64: 1, 128>}, {transform_indices = @transform_5, window_bounds = array<i64: 32, 128>}]} {
    %c0 = arith.constant 0 : index
    %c0_0 = arith.constant 0 : index
    %0 = vector.load %arg1[%c0, %c0_0] : memref<32x128xf32, #tpu.memory_space<vmem>>, vector<32x128xf32>
    %cst = arith.constant 0.000000e+00 : f32
    %1 = vector.broadcast %cst : f32 to vector<32x128xf32>
    %2 = arith.cmpf oge, %0, %1 : vector<32x128xf32>
    %c0_1 = arith.constant 0 : index
    %c0_2 = arith.constant 0 : index
    %3 = vector.load %arg3[%c0_1, %c0_2] : memref<1x128xf32, #tpu.memory_space<vmem>>, vector<1x128xf32>
    %4 = vector.broadcast %3 : vector<1x128xf32> to vector<32x128xf32>
    %5 = arith.mulf %4, %0 : vector<32x128xf32>
    %6 = arith.select %2, %0, %5 : vector<32x128xi1>, vector<32x128xf32>
    %c0_3 = arith.constant 0 : index
    %c0_4 = arith.constant 0 : index
    %7 = vector.load %arg4[%c0_3, %c0_4] : memref<128x128xf32, #tpu.memory_space<vmem>>, vector<128x128xf32>
    %cst_5 = arith.constant dense<0.000000e+00> : vector<32x128xf32>
    %8 = tpu.matmul %6, %7, %cst_5 {dimension_numbers = #tpu.dot_dimension_numbers<[1], [0], [0], [1], [0, 0, 1, 1], [], []>} : vector<32x128xf32>, vector<128x128xf32>, vector<32x128xf32> -> vector<32x128xf32>
    %c0_6 = arith.constant 0 : index
    %c0_7 = arith.constant 0 : index
    %9 = vector.load %arg2[%c0_6, %c0_7] : memref<32x1xf32, #tpu.memory_space<vmem>>, vector<32x1xf32>
    %cst_8 = arith.constant 0.000000e+00 : f32
    %10 = vector.broadcast %cst_8 : f32 to vector<32x1xf32>
    %11 = arith.cmpf ogt, %9, %10 : vector<32x1xf32>
    %c0_9 = arith.constant 0 : index
    %c0_10 = arith.constant 0 : index
    %12 = vector.load %arg5[%c0_9, %c0_10] : memref<1x128xf32, #tpu.memory_space<vmem>>, vector<1x128xf32>
    %13 = vector.shape_cast %11 : vector<32x1xi1> to vector<32x1xi1>
    %14 = vector.broadcast %13 : vector<32x1xi1> to vector<32x128xi1>
    %15 = vector.shape_cast %12 : vector<1x128xf32> to vector<1x128xf32>
    %16 = vector.broadcast %15 : vector<1x128xf32> to vector<32x128xf32>
    %17 = arith.select %14, %16, %8 : vector<32x128xi1>, vector<32x128xf32>
    %c0_11 = arith.constant 0 : index
    %c0_12 = arith.constant 0 : index
    %18 = vector.load %arg6[%c0_11, %c0_12] : memref<32x128xf32, #tpu.memory_space<vmem>>, vector<32x128xf32>
    tpu.vector_store %arg6[%c0_11, %c0_12], %17 {strides = array<i32>} : memref<32x128xf32, #tpu.memory_space<vmem>>, vector<32x128xf32>,
    return
  }
  func.func @transform_0(%arg0: i32) -> (i32, i32) {
    %c0_i32 = arith.constant 0 : i32
    %c0_i32_0 = arith.constant 0 : i32
    return %arg0, %c0_i32 : i32, i32
  }
  func.func @transform_1(%arg0: i32) -> (i32, i32) {
    %c0_i32 = arith.constant 0 : i32
    %c0_i32_0 = arith.constant 0 : i32
    return %arg0, %c0_i32 : i32, i32
  }
  func.func @transform_2(%arg0: i32) -> (i32, i32) {
    %c0_i32 = arith.constant 0 : i32
    %c0_i32_0 = arith.constant 0 : i32
    %c0_i32_1 = arith.constant 0 : i32
    return %c0_i32, %c0_i32_0 : i32, i32
  }
  func.func @transform_3(%arg0: i32) -> (i32, i32) {
    %c0_i32 = arith.constant 0 : i32
    %c0_i32_0 = arith.constant 0 : i32
    %c0_i32_1 = arith.constant 0 : i32
    return %c0_i32, %c0_i32_0 : i32, i32
  }
  func.func @transform_4(%arg0: i32) -> (i32, i32) {
    %c0_i32 = arith.constant 0 : i32
    %c0_i32_0 = arith.constant 0 : i32
    %c0_i32_1 = arith.constant 0 : i32
    return %c0_i32, %c0_i32_0 : i32, i32
  }
  func.func @transform_5(%arg0: i32) -> (i32, i32) {
    %c0_i32 = arith.constant 0 : i32
    %c0_i32_0 = arith.constant 0 : i32
    return %arg0, %c0_i32 : i32, i32
  }
}

</mosaic_0001>

<bundles_post_ra>
// kernel: tpu_custom_call.1
= control target key start
LH: loop header
LB: loop body
LE: loop exit
PB: predicated region body
PF: predicated region fallthrough
CT: control target
= control target key end

     0   :  { %10 = vsyncpa [#allocation3], 0  ;;  %s1003_s0 = inlined_call_operand.vmem [shape: f32[64,128], index: 0, kind: input, shape index: {}]   ;;  %s1004_s1 = inlined_call_operand.vmem [shape: f32[64,1], index: 1, kind: input, shape index: {}]   ;;  %s1005_s2 = inlined_call_operand.vmem [shape: f32[1,128], index: 2, kind: input, shape index: {}]   ;;  %s1006_s3 = inlined_call_operand.hbm [shape: f32[128,128], index: 3, kind: input, shape index: {}]   ;;  %s1007_s4 = inlined_call_operand.vmem [shape: f32[1,128], index: 4, kind: input, shape index: {}]   ;;  %s1008_s5 = inlined_call_operand.hbm [shape: f32[64,128], index: 5, kind: output, shape index: {}]  }
   0x1   :  { %11 = vsyncpa [#allocation4], 0 }
   0x2   :  { %13 = vsyncpa [#allocation4 + $0x1], 0  ;;  %s845_s18 = smov 0   ;;  %s847_s19 = smov 0  }
   0x3   :  { %s849_s20 = smov 0   ;;  %s851_s21 = smov 0  }
   0x4 LB: > { %s866_s22 = sadd.s32 4294967295, %s806_s21   ;;  %s530_s23 = sadd.s32 4294967294, %s806_s21   ;;  %s806_s21 = sphi %s851_s21, %s1024_s21   ;;  %s802_s20 = sphi %s849_s20, %s1023_s20   ;;  %s798_s19 = sphi %s847_s19, %s1022_s19   ;;  %s794_s18 = sphi %s845_s18, %s1021_s18  }
   0x5   : > { %s870_s24 = sadd.s32 1, %s806_s21   ;;  %s141_s25 = sadd.s32 1, %s802_s20 }
   0x6   : > { %s138_s26 = ssub.s32 %s806_s21, %s870_s24  ;;  %p151_p0 = scmp.ne.s32.totalorder %s802_s20, %s798_s19 }
   0x7   : > { %p139_p1 = scmp.eq.s32.totalorder %s138_s26, 0  ;;  %p152_p2 = scmp.eq.s32.totalorder %s866_s22, 1 }
   0x8   : > { %p157_p3 = scmp.ne.s32.totalorder %s798_s19, %s794_s18  ;;  %p158_p4 = scmp.eq.s32.totalorder %s530_s23, 1 }
   0x9   : > { %s881_s27 = scalar_select %p139_p1, %s802_s20, %s141_s25  }
   0xa   : > { %p883_p5 = por %p152_p2, %p151_p0  ;;  %p887_p6 = por %p158_p4, %p157_p3 }
   0xb   : > { %p531_p7 = scmp.ge.s32.totalorder %s806_s21, 1  ;;  %p165_p8 = scmp.lt.s32.totalorder %s806_s21, 3 }
   0xc   : > { %s1012_s28 = scalar_select %p883_p5, 1, 0 }
   0xd   : > { %s1013_s29 = scalar_select %p887_p6, 1, 0 }
   0xe   : > { %p1009_p9 = scmp.eq.s32.totalorder %s866_s22, 0  ;;  %p894_p10 = pnand %p531_p7, %p165_p8 }
   0xf   : > { %s808_s6 = smov [#allocation2]   ;;  %s712_s11 = scalar_lea.hbm %s1006_s3, 2048 }
  0x10   : > { %s1014_s30 = scalar_select %p894_p10, 1, 0 }
  0x11   : > { %s180_s7 = sshll.u32 %s808_s6, 4  ;;  %p661_p11 = pneg %p894_p10  ;;  %s181_s7 = int_to_ptr.vmem [resolvable:$true] %s180_s7 }
  0x12   : > { %p713_p13 = scmp.ne.s32.totalorder %s1006_s3, %s712_s11  ;;  %p719_p3 = scmp.lt.u32.totalorder %s712_s11, %s1006_s3 }
  0x13   : > { %p902_p12 = pnand %p1009_p9, %p661_p11 }
  0x15   : > { %p714_p0 = pneg %p902_p12 }
  0x17   : > { %p715_p1 = pnand %p714_p0, %p713_p13 }
  0x19   : > { %p716_p2 = pneg %p715_p1 }
  0x1b   : > { %p721_p4 = pnand %p719_p3, %p716_p2 }
  0x1d   : > { %724 = shalt.err (!%p721_p4)
}
  0x1e   : > { %s725_s16 = scalar_lea.vmem %s181_s7, 2048  ;;  %p733_p9 = scmp.lt.s32.totalorder %s181_s7, %s181_s7 }
  0x1f   : > { %p726_p7 = scmp.ne.s32.totalorder %s181_s7, %s725_s16  ;;  %p734_p6 = scmp.lt.s32.totalorder %s725_s16, %s725_s16 }
  0x21   : > { %p728_p8 = pnand %p726_p7, %p714_p0  ;;  %p735_p5 = por %p734_p6, %p733_p9 }
  0x23   : > { %p729_p11 = pneg %p728_p8 }
  0x25   : > { %p736_p10 = pnand %p735_p5, %p729_p11 }
  0x27   : > { %739 = shalt.err (!%p736_p10)
}
  0x28   : > { %s809_s17 = smov 128   ;;  %s810_s23 = smov 8  }
  0x29   : > { %664 = dma.hbm_to_vmem [thread:$0]  (!%p902_p12), %s1006_s3, 2048, %s181_s7, [#allocation3], %s809_s17, %s809_s17, %s810_s23  }
  0x2a   : > { %p1016_p13 = scmp.ne.s32.totalorder %s1014_s30, 0 }
  0x2b   : > { %p1017_p1 = scmp.eq.s32.totalorder (!%p1016_p13), %s866_s22, 0 }
  0x2c   : > { %217 = sbr.rel (%p1016_p13) target bundleno = 316 (0x13c), region = 40 }
  0x33   : > { %785 = dma.done.wait (%p1017_p1), [#allocation3], 2048   ;;  %p1018_p0 = pmov %p1017_p1 }
  0x34   : > { %s537_s6 = sshll.u32 %s866_s22, 2  ;;  %v811_v0 = vmov 0   ;;  %v286_v1 = vld [vmem:[#allocation2] sm:$0xff]  ;;  %v287_v2 = vld [vmem:[#allocation2 + $0x8] sm:$0xff]  ;;  %v288_v3 = vld [vmem:[#allocation2 + $0x10] sm:$0xff]  ;;  %s247_s15 = sand.u32 1, %s798_s19  }
  0x35   : > { %787 = vsyncadd (%p1018_p0), [#allocation3], 4294965248  ;;  %p251_p5 = scmp.lt.s32.totalorder %s537_s6, 7  ;;  %711 = vset.pattern.permute.xlu1 %v811_v0  ;;  %710 = vset.pattern.permute.xlu0 %v811_v0  ;;  %v607_v4 = vpack.c.bf16 %v287_v2, %v286_v1  ;;  %v289_v5 = vld [vmem:[#allocation2 + $0x18] sm:$0xff]  ;;  %v290_v7 = vld [vmem:[#allocation2 + $0x20] sm:$0xff]  ;;  %s536_s16 = sshll.u32 %s247_s15, 5 }
  0x36   : > { %v611_v6 = vpack.c.bf16 %v289_v5, %v288_v3  ;;  %v291_v8 = vld [vmem:[#allocation2 + $0x28] sm:$0xff]  ;;  %v941_v11 = vld [vmem:[%s1005_s2] ss:$0 sm:$0xff]  ;;  %v292_v12 = vld [vmem:[#allocation2 + $0x30] sm:$0xff]  ;;  %s249_s17 = scalar_lea.vmem [#allocation5], %s536_s16  ;;  %s548_s25 = sshll.u32 %s866_s22, 9 }
  0x37   : > { %s1026_s6 = smov (!%p251_p5, %s537_s6), 7  ;;  %608 = vmatprep.subr.bf16.mxu0 %v607_v4  ;;  %639 = vmatprep.subr.bf16.mxu1 %v607_v4  ;;  %v615_v9 = vpack.c.bf16 %v291_v8, %v290_v7  ;;  %v293_v13 = vld [vmem:[#allocation2 + $0x38] sm:$0xff]  ;;  %v294_v25 = vld [vmem:[#allocation2 + $0x40] sm:$0xff]  ;;  %v295_v26 = vld [vmem:[#allocation2 + $0x48] sm:$0xff]  ;;  %s444_s23 = sshll.u32 %s249_s17, 4  ;;  %s955_s23 = int_to_ptr.vmem [resolvable:$true] %s444_s23 }
  0x38   : > { %s538_s8 = sshll.u32 %s1026_s6, 3  ;;  %610 = vmatpush3.bf16.msra.mxu0 %v607_v4  ;;  %647 = vmatpush3.bf16.msra.mxu1 %v607_v4  ;;  %v619_v22 = vpack.c.bf16 %v293_v13, %v292_v12  ;;  %v623_v30 = vpack.c.bf16 %v295_v26, %v294_v25  ;;  %v296_v31 = vld [vmem:[#allocation2 + $0x50] sm:$0xff]  ;;  %v297_v32 = vld [vmem:[#allocation2 + $0x58] sm:$0xff]  ;;  %v298_v34 = vld [vmem:[#allocation2 + $0x60] sm:$0xff]  ;;  %s960_s7 = scalar_lea.hbm %s1008_s5, %s548_s25 }
  0x39   : > { %s932_s9 = scalar_lea.vmem %s1003_s0, %s538_s8  ;;  %s260_s12 = scalar_lea.vmem %s1004_s1, %s538_s8  ;;  %612 = vmatprep.subr.bf16.mxu0 %v611_v6  ;;  %640 = vmatprep.subr.bf16.mxu1 %v611_v6  ;;  %v627_v33 = vpack.c.bf16 %v297_v32, %v296_v31  ;;  %v299_v35 = vld [vmem:[#allocation2 + $0x68] sm:$0xff]  ;;  %v300_v37 = vld [vmem:[#allocation2 + $0x70] sm:$0xff]  ;;  %v301_v38 = vld [vmem:[#allocation2 + $0x78] sm:$0xff] }
  0x3a   : > { %v263_v10 = vld [vmem:[%s932_s9] sm:$0xff]  ;;  %v265_v15 = vld [vmem:[%s932_s9 + $0x10] sm:$0xff]  ;;  %v390_v19 = vld [vmem:[%s260_s12 + $0x18] sm:$0xff]  ;;  %v631_v36 = vpack.c.bf16 %v299_v35, %v298_v34  ;;  %v635_v39 = vpack.c.bf16 %v301_v38, %v300_v37  ;;  %s962_s22 = scalar_lea.sflag [#allocation4], %s247_s15  ;;  %p1019_p9 = scmp.ne.s32.totalorder %s1012_s28, 0 }
  0x3b   : > { %vm267_vm0 = vcmp.ge.f32.partialorder %v263_v10, 0.0  ;;  %v278_v14 = vmul.f32 %v941_v11, %v263_v10  ;;  %vm269_vm1 = vcmp.ge.f32.partialorder %v265_v15, 0.0  ;;  %v280_v16 = vmul.f32 %v941_v11, %v265_v15  ;;  %v389_v17 = vld [vmem:[%s260_s12 + $0x10] sm:$0xff]  ;;  %v387_v18 = vld [vmem:[%s260_s12] sm:$0xff]  ;;  %v388_v21 = vld [vmem:[%s260_s12 + $0x8] sm:$0xff]  ;;  %s812_s10 = smov [#allocation5]  }
  0x3c   : > { %614 = vmatpush3.bf16.msra.mxu0 %v611_v6  ;;  %648 = vmatpush3.bf16.msra.mxu1 %v611_v6  ;;  %vm393_vm2 = vcmp.gt.f32.partialorder %v389_v17, 0.0  ;;  %vm391_vm3 = vcmp.gt.f32.partialorder %v387_v18, 0.0  ;;  %vm394_vm4 = vcmp.gt.f32.partialorder %v390_v19, 0.0  ;;  %vm392_vm5 = vcmp.gt.f32.partialorder %v388_v21, 0.0  ;;  %v264_v40 = vld [vmem:[%s932_s9 + $0x8] sm:$0xff]  ;;  %v266_v41 = vld [vmem:[%s932_s9 + $0x18] sm:$0xff] }
  0x3d   : > { %v282_v20 = vsel %vm267_vm0, %v263_v10, %v278_v14  ;;  %616 = vmatprep.subr.bf16.mxu0 %v615_v9  ;;  %641 = vmatprep.subr.bf16.mxu1 %v615_v9  ;;  %v284_v23 = vsel %vm269_vm1, %v265_v15, %v280_v16  ;;  %v398_v24 = vsel %vm393_vm2, 1, %v811_v0  ;;  %v396_v27 = vsel %vm391_vm3, 1, %v811_v0  ;;  %v542_v50 = vld [vmem:[%s1007_s4] ss:$0 sm:$0xff]  ;;  %s740_s9 = scalar_lea.vmem %s955_s23, 512  ;;  %s744_s11 = sshll.u32 %s812_s10, 4  ;;  %s745_s11 = int_to_ptr.vmem [resolvable:$false] %s744_s11 }
  0x3e   : > { %601 = vmatprep.mubr.f32.mxu0 %v282_v20  ;;  %604 = vmatprep.mubr.f32.mxu1 %v284_v23  ;;  %v399_v28 = vsel %vm394_vm4, 1, %v811_v0  ;;  %v397_v29 = vsel %vm392_vm5, 1, %v811_v0  ;;  %v279_v42 = vmul.f32 %v941_v11, %v264_v40  ;;  %v281_v43 = vmul.f32 %v941_v11, %v266_v41  ;;  %p741_p6 = scmp.ne.s32.totalorder %s955_s23, %s740_s9  ;;  %s746_s12 = scalar_lea.vmem %s745_s11, 1024 }
  0x3f   : > { %407 = vperm.xlu1 %711, %v398_v24   ;;  %401 = vperm.xlu0 %710, %v396_v27   ;;  %vm268_vm6 = vcmp.ge.f32.partialorder %v264_v40, 0.0  ;;  %vm270_vm7 = vcmp.ge.f32.partialorder %v266_v41, 0.0  ;;  %p747_p2 = scmp.lt.s32.totalorder %s955_s23, %s745_s11  ;;  %p748_p3 = scmp.lt.s32.totalorder %s746_s12, %s740_s9 }
  0x40   : > { %618 = vmatpush3.bf16.msra.mxu0 %v615_v9  ;;  %649 = vmatpush3.bf16.msra.mxu1 %v615_v9  ;;  %v283_v44 = vsel %vm268_vm6, %v264_v40, %v279_v42  ;;  %v285_v45 = vsel %vm270_vm7, %v266_v41, %v281_v43  ;;  %p742_p10 = pnand %p741_p6, %p1019_p9 }
  0x41   : > { %620 = vmatprep.subr.bf16.mxu0 %v619_v22  ;;  %642 = vmatprep.subr.bf16.mxu1 %v619_v22  ;;  %p749_p4 = por %p748_p3, %p747_p2 }
  0x42   : > { %p743_p12 = pneg %p742_p10 }
  0x43   : > { %410 = vperm.xlu1 %711, %v399_v28   ;;  %404 = vperm.xlu0 %710, %v397_v29  }
  0x44   : > { %622 = vmatpush3.bf16.msra.mxu0 %v619_v22  ;;  %650 = vmatpush3.bf16.msra.mxu1 %v619_v22  ;;  %p750_p7 = pnand %p749_p4, %p743_p12 }
  0x45   : > { %624 = vmatprep.subr.bf16.mxu0 %v623_v30  ;;  %643 = vmatprep.subr.bf16.mxu1 %v623_v30 }
  0x48   : > { %626 = vmatpush3.bf16.msra.mxu0 %v623_v30  ;;  %651 = vmatpush3.bf16.msra.mxu1 %v623_v30 }
  0x49   : > { %628 = vmatprep.subr.bf16.mxu0 %v627_v33  ;;  %644 = vmatprep.subr.bf16.mxu1 %v627_v33 }
  0x4c   : > { %630 = vmatpush3.bf16.msra.mxu0 %v627_v33  ;;  %652 = vmatpush3.bf16.msra.mxu1 %v627_v33 }
  0x4d   : > { %632 = vmatprep.subr.bf16.mxu0 %v631_v36  ;;  %645 = vmatprep.subr.bf16.mxu1 %v631_v36 }
  0x50   : > { %634 = vmatpush3.bf16.msra.mxu0 %v631_v36  ;;  %653 = vmatpush3.bf16.msra.mxu1 %v631_v36 }
  0x51   : > { %636 = vmatprep.subr.bf16.mxu0 %v635_v39  ;;  %646 = vmatprep.subr.bf16.mxu1 %v635_v39 }
  0x54   : > { %638 = vmatpush3.bf16.msra.mxu0 %v635_v39  ;;  %654 = vmatpush3.bf16.msra.mxu1 %v635_v39 }
  0x57   : > { %602 = vmatmul.mubr.f32.vlgmr.msra.gmra.mrb[0].mxu0 %v283_v44  ;;  %605 = vmatmul.mubr.f32.vlgmr.msra.gmra.mrb[0].mxu1 %v285_v45 }
  0xbe   : > { %v408_v46 = vpop.permute.xlu1 %407  ;;  %v402_v47 = vpop.permute.xlu0 %401 }
  0xbf   : > { %vm414_vm10 = vcmp.eq.s32.totalorder %v408_v46, 1  ;;  %vm412_vm11 = vcmp.eq.s32.totalorder %v402_v47, 1 }
  0xc2   : > { %v411_v48 = vpop.permute.xlu1 %410  ;;  %v405_v49 = vpop.permute.xlu0 %404 }
  0xc3   : > { %vm415_vm8 = vcmp.eq.s32.totalorder %v411_v48, 1  ;;  %vm413_vm9 = vcmp.eq.s32.totalorder %v405_v49, 1 }
 0x12a   : > { %v603_v51 = vpop.f32.mrb[0].mxu0  ;;  %v606_v52 = vpop.f32.mrb[0].mxu1 }
 0x12b   : > { %v423_v53 = vsel %vm413_vm9, %v542_v50, %v603_v51  ;;  %v425_v54 = vsel %vm415_vm8, %v542_v50, %v606_v52  ;;  %v368_v55 = vpop.f32.mrb[1].mxu0  ;;  %v378_v56 = vpop.f32.mrb[1].mxu1 }
 0x12c   : > { %427 = vst [vmem:[%s249_s17 + $0x8] sm:$0xff] %v423_v53  ;;  %429 = vst [vmem:[%s249_s17 + $0x18] sm:$0xff] %v425_v54  ;;  %v422_v57 = vsel %vm412_vm11, %v542_v50, %v368_v55  ;;  %v424_v58 = vsel %vm414_vm10, %v542_v50, %v378_v56 }
 0x12d   : > { %426 = vst [vmem:[%s249_s17] sm:$0xff] %v422_v57  ;;  %428 = vst [vmem:[%s249_s17 + $0x10] sm:$0xff] %v424_v58 }
 0x12e   : > { %753 = shalt.err (!%p750_p7)
}
 0x12f   : > { %s754_s13 = scalar_lea.hbm %s960_s7, 512  ;;  %s758_s16 = scalar_lea.hbm %s1008_s5, 1024 }
 0x130   : > { %p755_p8 = scmp.ne.s32.totalorder %s960_s7, %s754_s13  ;;  %p759_p1 = scmp.lt.u32.totalorder %s960_s7, %s1008_s5 }
 0x131   : > { %p760_p0 = scmp.lt.u32.totalorder %s758_s16, %s754_s13  ;;  %p762_p6 = scmp.lt.u32.totalorder %s754_s13, %s960_s7 }
 0x132   : > { %p756_p11 = pnand %p755_p8, %p1019_p9 }
 0x133   : > { %p761_p5 = por %p760_p0, %p759_p1 }
 0x134   : > { %p757_p13 = pneg %p756_p11 }
 0x135   : > { %p763_p10 = por %p762_p6, %p761_p5 }
 0x137   : > { %p764_p12 = pnand %p763_p10, %p757_p13 }
 0x139   : > { %767 = shalt.err (!%p764_p12)
}
 0x13a   : > { %s813_s26 = smov 128   ;;  %s814_s6 = smov 8  }
 0x13b   : > { %659 = dma.vmem_to_hbm [thread:$0]  (%p1019_p9), %s955_s23, 512, %s960_s7, %s962_s22, %s813_s26, %s813_s26, %s814_s6  }
 0x13c PF: > { %p671_p2 = scmp.ge.s32.totalorder %s806_s21, 2  ;;  %s459_s8 = sand.u32 1, %s794_s18  }
 0x13d   : > { %p1020_p3 = scmp.ne.s32.totalorder %s1013_s29, 0  ;;  %s460_s30 = scalar_lea.sflag [#allocation4], %s459_s8 }
 0x13f   : > { %p666_p4 = pnand %p671_p2, %p1020_p3 }
 0x141   : > { %789 = dma.done.wait (!%p666_p4), %s460_s30, 512  }
 0x142   : > { %791 = vsyncadd (!%p666_p4), %s460_s30, 4294966784  ;;  %p16_p7 = scmp.ge.s32.totalorder %s870_s24, 4   ;;  %s1021_s18 = smov %s798_s19 }
 0x143   : > { %s1022_s19 = smov %s802_s20  ;;  %s1023_s20 = smov %s881_s27 }
 0x144   : > { %s1024_s21 = smov %s870_s24  ;;  %18 = sbr.rel (!%p16_p7) target bundleno = 4 (0x4), region = 83 }
 0x14b   :  { %465 = vsyncpa [#allocation3], 1 }
 0x14c   :  { %467 = vsyncpa [#allocation3 + $0x1], 1 }
 0x14d   :  { %468 = vsyncpa [#allocation4], 1 }
 0x14e   :  { %470 = vsyncpa [#allocation4 + $0x1], 1 }

</bundles_post_ra>
